<compile_context>
chip_gen: v6e
topology: v6e:2x2x1
jax: 0.10.0
libtpu: 0.0.40
codegen_flags: <defaults>
</compile_context>

<pallas_src>
import functools

import jax
import jax.numpy as jnp
from jax import lax
from jax.experimental import pallas as pl
from jax.experimental.pallas import tpu as pltpu

MARGIN = 1.0
ALPHA = 0.0
NUM_CORES = 2  # v7x has 2 TensorCores; harmless (sequential) on 1-TC chips.


def _fold_partial(val):
    """Fold a (tb, n) f32 tile into an (8, 128) tile of partial sums using only
    VPU vreg adds (pairwise tree). Ragged edges are zero-padded."""
    tb, n = val.shape
    lane_pad = (-n) % 128
    if lane_pad:
        val = jnp.concatenate(
            [val, jnp.zeros((tb, lane_pad), val.dtype)], axis=1)
    sub_pad = (-tb) % 8
    if sub_pad:
        val = jnp.concatenate(
            [val, jnp.zeros((sub_pad, val.shape[1]), val.dtype)], axis=0)
    rows, cols = val.shape
    chunks = [
        val[r * 8:(r + 1) * 8, c * 128:(c + 1) * 128]
        for r in range(rows // 8)
        for c in range(cols // 128)
    ]
    while len(chunks) > 1:
        nxt = [a + b for a, b in zip(chunks[0::2], chunks[1::2])]
        if len(chunks) % 2:
            nxt.append(chunks[-1])
        chunks = nxt
    return chunks[0]


def _limloss_kernel(fxi_ref, fxj_ref, w_ref, out_ref, *,
                    batch, tile_b, total_tiles, tiles_per_core, compute_dtype):
    c = pl.program_id(0)              # TensorCore slice ("parallel")
    i = pl.program_id(1)              # batch tile within slice ("arbitrary")
    t = c * tiles_per_core + i        # global batch-tile index

    @pl.when(i == 0)
    def _init():
        out_ref[...] = jnp.zeros_like(out_ref)

    # Hinge in the compute dtype (bf16 stays bf16 on v6e/v7x VPUs); product and
    # accumulation in f32. Weak Python-float constants do not promote bf16.
    fxi = fxi_ref[...].astype(compute_dtype)
    fxj = fxj_ref[...].astype(compute_dtype)
    hinge = jnp.maximum((MARGIN - fxi) + fxj, ALPHA)
    val = w_ref[...].astype(jnp.float32) * hinge.astype(jnp.float32)

    needs_mask = (batch % tile_b) != 0                              # static
    has_padded_tiles = total_tiles != tiles_per_core * NUM_CORES    # static

    if needs_mask:
        # All-but-last valid tiles: unmasked accumulate (also excludes any
        # padded per-core tiles, which have t >= total_tiles).
        @pl.when(t < total_tiles - 1)
        def _accum_full():
            out_ref[...] += _fold_partial(val)

        # Last valid tile: mask rows past the end of the batch. The mask is a
        # cheap (tile_b, 1) compare; where() never propagates the undefined
        # padded-row data into the sum.
        rows_last = batch - (total_tiles - 1) * tile_b              # static
        @pl.when(t == total_tiles - 1)
        def _accum_masked():
            row_ids = lax.broadcasted_iota(jnp.int32, (tile_b, 1), 0)
            masked = jnp.where(row_ids < rows_last, val, jnp.float32(0.0))
            out_ref[...] += _fold_partial(masked)
    elif has_padded_tiles:
        @pl.when(t < total_tiles)
        def _accum_valid():
            out_ref[...] += _fold_partial(val)
    else:
        out_ref[...] += _fold_partial(val)


def _align_up(x, a):
    return ((x + a - 1) // a) * a


def _choose_tile_b(B, N, itemsize, align, vmem_budget_bytes=12 << 20):
    # 3 inputs x 2 pipeline buffers x tile_b x N x itemsize <= budget
    # (~2 MiB per input block; big enough to amortize the ~0.35 us/step
    # overhead, small enough to leave VMEM headroom on v7x).
    tb = vmem_budget_bytes // (3 * 2 * N * itemsize)
    tb = max(align, (tb // align) * align)
    if tb >= B:
        return B  # whole batch in one tile ("block == full dim" exception)
    # Keep at least one tile per TensorCore when the batch is split.
    per_core = max(align, _align_up(pl.cdiv(B, NUM_CORES), align))
    return min(tb, per_core)


def limloss(fxi, fxj, w, *, tile_b=None):
    """Compute LIMloss. fxi, fxj, w: [B, N] arrays (any float dtype)."""
    assert fxi.shape == fxj.shape == w.shape and fxi.ndim == 2
    B, N = fxi.shape
    itemsize = max(
        jnp.dtype(fxi.dtype).itemsize,
        jnp.dtype(fxj.dtype).itemsize,
        jnp.dtype(w.dtype).itemsize,
    )
    # Sublane packing of the widest dtype: 8 rows (f32), 16 (bf16), 32 (int8).
    align = 32 // itemsize if itemsize in (1, 2, 4) else 8
    if tile_b is None:
        tile_b = _choose_tile_b(B, N, itemsize, align)
    tile_b = min(tile_b, B)
    total_tiles = pl.cdiv(B, tile_b)
    tiles_per_core = pl.cdiv(total_tiles, NUM_CORES)

    # bf16-native hinge on bf16 inputs (v6e/v7x VPU); everything else in f32.
    # TODO(synk): v5e has no bf16 VPU; a chip-version branch to force f32 there
    # is not worth it for this memory-bound kernel (bf16 still lowers fine).
    if fxi.dtype == jnp.bfloat16 and fxj.dtype == jnp.bfloat16:
        compute_dtype = jnp.bfloat16
    else:
        compute_dtype = jnp.float32

    def in_map(c, i):
        t = c * tiles_per_core + i
        # Clamp padded (skipped) tiles in range; their data never accumulates.
        return (jnp.minimum(t, total_tiles - 1), 0)

    kernel = functools.partial(
        _limloss_kernel, batch=B, tile_b=tile_b, total_tiles=total_tiles,
        tiles_per_core=tiles_per_core, compute_dtype=compute_dtype)

    partials = pl.pallas_call(
        kernel,
        out_shape=jax.ShapeDtypeStruct((NUM_CORES * 8, 128), jnp.float32),
        grid_spec=pltpu.PrefetchScalarGridSpec(
            num_scalar_prefetch=0,
            grid=(NUM_CORES, tiles_per_core),
            in_specs=[
                pl.BlockSpec((tile_b, N), in_map),
                pl.BlockSpec((tile_b, N), in_map),
                pl.BlockSpec((tile_b, N), in_map),
            ],
            out_specs=pl.BlockSpec((8, 128), lambda c, i: (c, 0)),
        ),
        compiler_params=pltpu.CompilerParams(
            dimension_semantics=("parallel", "arbitrary"),
            vmem_limit_bytes=48 << 20,
        ),
    )(fxi, fxj, w)
    # Single tiny cross-lane/core reduction, once, outside the kernel.
    return jnp.sum(partials) * (1.0 / B)


def limloss_ref(fxi, fxj, w):
    # Pure-JAX reference for validation (matches the PyTorch forward).
    return jnp.mean(jnp.sum(w * jnp.maximum(ALPHA, MARGIN - fxi + fxj), axis=1))


if __name__ == "__main__":
    key = jax.random.PRNGKey(0)
    k1, k2, k3 = jax.random.split(key, 3)

    B, N = 20, 256  # small; B deliberately not a multiple of the forced tile
    fxi = jax.random.normal(k1, (B, N), dtype=jnp.float32)
    fxj = jax.random.normal(k2, (B, N), dtype=jnp.float32)
    w = jax.random.uniform(k3, (B, N), dtype=jnp.float32)

    ref = limloss_ref(fxi, fxj, w)

    # f32, forced small tile: exercises the pipelined multi-tile path, the
    # ragged-last-tile mask, and the padded-tile skip on the dual-core grid.
    loss = limloss(fxi, fxj, w, tile_b=8)
    jax.block_until_ready(loss)
    assert jnp.allclose(loss, ref, rtol=1e-5, atol=1e-5), (loss, ref)

    # Default (whole-batch) tile, f32.
    loss2 = limloss(fxi, fxj, w)
    jax.block_until_ready(loss2)
    assert jnp.allclose(loss2, ref, rtol=1e-5, atol=1e-5), (loss2, ref)

    # bf16 inputs: DMA'd at native width, bf16 hinge, f32 accumulation.
    fxi_bf = fxi.astype(jnp.bfloat16)
    fxj_bf = fxj.astype(jnp.bfloat16)
    w_bf = w.astype(jnp.bfloat16)
    loss_bf = limloss(fxi_bf, fxj_bf, w_bf)
    jax.block_until_ready(loss_bf)
    ref_bf = limloss_ref(
        fxi_bf.astype(jnp.float32),
        fxj_bf.astype(jnp.float32),
        w_bf.astype(jnp.float32),
    )
    # bf16-native hinge adds bf16 rounding relative to the f32 reference.
    assert jnp.allclose(loss_bf, ref_bf, rtol=2e-2, atol=2e-2), (loss_bf, ref_bf)

    print("KERNEL_OK")
</pallas_src>

<mosaic_0001>
module attributes {stable_mosaic.version = 11 : i64} {
  func.func @_limloss_kernel(%arg0: i32, %arg1: i32, %arg2: memref<8x256xf32, #tpu.memory_space<vmem>>, %arg3: memref<8x256xf32, #tpu.memory_space<vmem>>, %arg4: memref<8x256xf32, #tpu.memory_space<vmem>>, %arg5: memref<8x128xf32, #tpu.memory_space<vmem>>) attributes {dimension_semantics = [#tpu.dimension_semantics<parallel>, #tpu.dimension_semantics<arbitrary>], iteration_bounds = array<i64: 2, 2>, scalar_prefetch = 0 : i64, scratch_operands = 0 : i64, tpu.core_type = #tpu.core_type<tc>, window_params = [{transform_indices = @transform_0, window_bounds = array<i64: 8, 256>}, {transform_indices = @transform_1, window_bounds = array<i64: 8, 256>}, {transform_indices = @transform_2, window_bounds = array<i64: 8, 256>}, {transform_indices = @transform_3, window_bounds = array<i64: 8, 128>}]} {
    %c2_i32 = arith.constant 2 : i32
    %0 = arith.muli %arg0, %c2_i32 : i32
    %1 = arith.addi %0, %arg1 : i32
    %c0_i32 = arith.constant 0 : i32
    %2 = arith.cmpi eq, %arg1, %c0_i32 : i32
    %3 = arith.extui %2 : i1 to i32
    %c0_i32_0 = arith.constant 0 : i32
    %4 = arith.cmpi ne, %3, %c0_i32_0 : i32
    scf.if %4 {
      %cst_11 = arith.constant 0.000000e+00 : f32
      %20 = vector.broadcast %cst_11 : f32 to vector<8x128xf32>
      %c0_12 = arith.constant 0 : index
      %c0_13 = arith.constant 0 : index
      %21 = vector.load %arg5[%c0_12, %c0_13] : memref<8x128xf32, #tpu.memory_space<vmem>>, vector<8x128xf32>
      tpu.vector_store %arg5[%c0_12, %c0_13], %20 {strides = array<i32>} : memref<8x128xf32, #tpu.memory_space<vmem>>, vector<8x128xf32>,
    } else {
    }
    %c0 = arith.constant 0 : index
    %c0_1 = arith.constant 0 : index
    %5 = vector.load %arg2[%c0, %c0_1] : memref<8x256xf32, #tpu.memory_space<vmem>>, vector<8x256xf32>
    %c0_2 = arith.constant 0 : index
    %c0_3 = arith.constant 0 : index
    %6 = vector.load %arg3[%c0_2, %c0_3] : memref<8x256xf32, #tpu.memory_space<vmem>>, vector<8x256xf32>
    %cst = arith.constant 1.000000e+00 : f32
    %7 = vector.broadcast %cst : f32 to vector<8x256xf32>
    %8 = arith.subf %7, %5 : vector<8x256xf32>
    %9 = arith.addf %8, %6 : vector<8x256xf32>
    %cst_4 = arith.constant 0.000000e+00 : f32
    %10 = vector.broadcast %cst_4 : f32 to vector<8x256xf32>
    %11 = arith.maximumf %9, %10 : vector<8x256xf32>
    %c0_5 = arith.constant 0 : index
    %c0_6 = arith.constant 0 : index
    %12 = vector.load %arg4[%c0_5, %c0_6] : memref<8x256xf32, #tpu.memory_space<vmem>>, vector<8x256xf32>
    %13 = arith.mulf %12, %11 : vector<8x256xf32>
    %c2_i32_7 = arith.constant 2 : i32
    %14 = arith.cmpi slt, %1, %c2_i32_7 : i32
    %15 = arith.extui %14 : i1 to i32
    %c0_i32_8 = arith.constant 0 : i32
    %16 = arith.cmpi ne, %15, %c0_i32_8 : i32
    scf.if %16 {
      %c0_11 = arith.constant 0 : index
      %c0_12 = arith.constant 0 : index
      %20 = vector.load %arg5[%c0_11, %c0_12] : memref<8x128xf32, #tpu.memory_space<vmem>>, vector<8x128xf32>
      %21 = vector.extract_strided_slice %13 {offsets = [0, 0], sizes = [8, 128], strides = [1, 1]} : vector<8x256xf32> to vector<8x128xf32>
      %22 = vector.extract_strided_slice %13 {offsets = [0, 128], sizes = [8, 128], strides = [1, 1]} : vector<8x256xf32> to vector<8x128xf32>
      %23 = arith.addf %21, %22 : vector<8x128xf32>
      %24 = arith.addf %20, %23 : vector<8x128xf32>
      %c0_13 = arith.constant 0 : index
      %c0_14 = arith.constant 0 : index
      %25 = vector.load %arg5[%c0_13, %c0_14] : memref<8x128xf32, #tpu.memory_space<vmem>>, vector<8x128xf32>
      tpu.vector_store %arg5[%c0_13, %c0_14], %24 {strides = array<i32>} : memref<8x128xf32, #tpu.memory_space<vmem>>, vector<8x128xf32>,
    } else {
    }
    %c2_i32_9 = arith.constant 2 : i32
    %17 = arith.cmpi eq, %1, %c2_i32_9 : i32
    %18 = arith.extui %17 : i1 to i32
    %c0_i32_10 = arith.constant 0 : i32
    %19 = arith.cmpi ne, %18, %c0_i32_10 : i32
    scf.if %19 {
      %20 = tpu.iota {dimensions = array<i32: 0>} : vector<8x1xi32>
      %c4_i32 = arith.constant 4 : i32
      %21 = vector.broadcast %c4_i32 : i32 to vector<8x1xi32>
      %22 = arith.cmpi slt, %20, %21 : vector<8x1xi32>
      %cst_11 = arith.constant 0.000000e+00 : f32
      %23 = vector.shape_cast %22 : vector<8x1xi1> to vector<8x1xi1>
      %24 = vector.broadcast %23 : vector<8x1xi1> to vector<8x256xi1>
      %25 = vector.broadcast %cst_11 : f32 to vector<8x256xf32>
      %26 = arith.select %24, %13, %25 : vector<8x256xi1>, vector<8x256xf32>
      %c0_12 = arith.constant 0 : index
      %c0_13 = arith.constant 0 : index
      %27 = vector.load %arg5[%c0_12, %c0_13] : memref<8x128xf32, #tpu.memory_space<vmem>>, vector<8x128xf32>
      %28 = vector.extract_strided_slice %26 {offsets = [0, 0], sizes = [8, 128], strides = [1, 1]} : vector<8x256xf32> to vector<8x128xf32>
      %29 = vector.extract_strided_slice %26 {offsets = [0, 128], sizes = [8, 128], strides = [1, 1]} : vector<8x256xf32> to vector<8x128xf32>
      %30 = arith.addf %28, %29 : vector<8x128xf32>
      %31 = arith.addf %27, %30 : vector<8x128xf32>
      %c0_14 = arith.constant 0 : index
      %c0_15 = arith.constant 0 : index
      %32 = vector.load %arg5[%c0_14, %c0_15] : memref<8x128xf32, #tpu.memory_space<vmem>>, vector<8x128xf32>
      tpu.vector_store %arg5[%c0_14, %c0_15], %31 {strides = array<i32>} : memref<8x128xf32, #tpu.memory_space<vmem>>, vector<8x128xf32>,
    } else {
    }
    return
  }
  func.func @transform_0(%arg0: i32, %arg1: i32) -> (i32, i32) {
    %c2_i32 = arith.constant 2 : i32
    %0 = arith.muli %arg0, %c2_i32 : i32
    %1 = arith.addi %0, %arg1 : i32
    %c2_i32_0 = arith.constant 2 : i32
    %2 = arith.minsi %1, %c2_i32_0 : i32
    %c0_i32 = arith.constant 0 : i32
    %c0_i32_1 = arith.constant 0 : i32
    return %2, %c0_i32 : i32, i32
  }
  func.func @transform_1(%arg0: i32, %arg1: i32) -> (i32, i32) {
    %c2_i32 = arith.constant 2 : i32
    %0 = arith.muli %arg0, %c2_i32 : i32
    %1 = arith.addi %0, %arg1 : i32
    %c2_i32_0 = arith.constant 2 : i32
    %2 = arith.minsi %1, %c2_i32_0 : i32
    %c0_i32 = arith.constant 0 : i32
    %c0_i32_1 = arith.constant 0 : i32
    return %2, %c0_i32 : i32, i32
  }
  func.func @transform_2(%arg0: i32, %arg1: i32) -> (i32, i32) {
    %c2_i32 = arith.constant 2 : i32
    %0 = arith.muli %arg0, %c2_i32 : i32
    %1 = arith.addi %0, %arg1 : i32
    %c2_i32_0 = arith.constant 2 : i32
    %2 = arith.minsi %1, %c2_i32_0 : i32
    %c0_i32 = arith.constant 0 : i32
    %c0_i32_1 = arith.constant 0 : i32
    return %2, %c0_i32 : i32, i32
  }
  func.func @transform_3(%arg0: i32, %arg1: i32) -> (i32, i32) {
    %c0_i32 = arith.constant 0 : i32
    %c0_i32_0 = arith.constant 0 : i32
    return %arg0, %c0_i32 : i32, i32
  }
}

</mosaic_0001>

<bundles_post_ra>
// kernel: tpu_custom_call.1
= control target key start
LH: loop header
LB: loop body
LE: loop exit
PB: predicated region body
PF: predicated region fallthrough
CT: control target
= control target key end

     0   :  { %s1148_s0 = inlined_call_operand.hbm [shape: f32[20,256], index: 0, kind: input, shape index: {}]   ;;  %s1149_s1 = inlined_call_operand.hbm [shape: f32[20,256], index: 1, kind: input, shape index: {}]   ;;  %s1150_s2 = inlined_call_operand.hbm [shape: f32[20,256], index: 2, kind: input, shape index: {}]   ;;  %s1151_s3 = inlined_call_operand.hbm [shape: f32[16,128], index: 3, kind: output, shape index: {}]  }
   0x1   :  { %1157 = sst [smem:[#allocation18_spill]] %s1148_s0 }
   0x2   :  { %1158 = sst [smem:[#allocation19_spill]] %s1149_s1 }
   0x3   :  { %8 = vsyncpa [#allocation3], 0 }
   0x4   :  { %10 = vsyncpa [#allocation3 + $0x1], 0 }
   0x5   :  { %11 = vsyncpa [#allocation6], 0 }
   0x6   :  { %13 = vsyncpa [#allocation6 + $0x1], 0 }
   0x7   :  { %14 = vsyncpa [#allocation4], 0 }
   0x8   :  { %16 = vsyncpa [#allocation4 + $0x1], 0  ;;  %s888_s12 = smov 0   ;;  %s890_s13 = smov 0  }
   0x9   :  { %s892_s14 = smov 0   ;;  %s894_s15 = smov 0  }
   0xa   :  { %s896_s16 = smov 0   ;;  %s898_s17 = smov 0  }
   0xb   :  { %s900_s18 = smov 0   ;;  %s902_s19 = smov 0  }
   0xc   :  { %s904_s20 = smov 0   ;;  %s906_s21 = smov 0  }
   0xd   :  { %s908_s22 = smov 0  }
   0xe LB: > { %1159 = sst [smem:[#allocation12_spill]] %s853_s20  ;;  %s944_s23 = sadd.s32 4294967295, %s861_s22   ;;  %s861_s22 = sphi %s908_s22, %s22_s22   ;;  %s857_s21 = sphi %s906_s21, %s1179_s21   ;;  %s853_s20 = sphi %s904_s20, %s1178_s20   ;;  %s849_s19 = sphi %s902_s19, %s1177_s19   ;;  %s845_s18 = sphi %s900_s18, %s1176_s18   ;;  %s841_s17 = sphi %s898_s17, %s1185_s17   ;;  %s837_s16 = sphi %s896_s16, %s1184_s16   ;;  %s833_s15 = sphi %s894_s15, %s1183_s15   ;;  %s829_s14 = sphi %s892_s14, %s1182_s14   ;;  %s825_s13 = sphi %s890_s13, %s1181_s13   ;;  %s821_s12 = sphi %s888_s12, %s1180_s12  }
   0xf   : > { %1160 = sst [smem:[#allocation13_spill]] %s857_s21  ;;  %s503_s24 = sadd.s32 4294967294, %s861_s22  }
  0x10   : > { %s31_s25 = sadd.s32 1, %s853_s20  ;;  %s34_s26 = sadd.s32 1, %s857_s21 }
  0x11   : > { %p32_p0 = scmp.ge.s32.totalorder %s31_s25, 2  ;;  %s504_s27 = sshll.u32 %s857_s21, 1 }
  0x12   : > { %s39_s28 = sadd.s32 %s853_s20, %s504_s27  ;;  %s49_s29 = sadd.s32 1, %s841_s17 }
  0x13   : > { %s1187_s25 = smov (%p32_p0, %s31_s25), 0  ;;  %s1189_s26 = smov (!%p32_p0, %s34_s26), %s857_s21 }
  0x14   : > { %1161 = sst [smem:[#allocation14_spill]] %s1187_s25  ;;  %p40_p1 = scmp.lt.s32.totalorder %s39_s28, 2 }
  0x15   : > { %p56_p2 = scmp.ne.s32.totalorder %s841_s17, %s837_s16  ;;  %p36_p3 = scmp.ge.s32.totalorder %s1189_s26, 2 }
  0x16   : > { %p57_p4 = scmp.eq.s32.totalorder %s861_s22, 0  ;;  %s1191_s28 = smov (!%p40_p1, %s39_s28), 2 }
  0x17   : > { %s1193_s26 = smov (%p36_p3, %s1189_s26), 0  ;;  %p62_p6 = scmp.ne.s32.totalorder %s837_s16, %s833_s15 }
  0x18   : > { %1162 = sst [smem:[#allocation15_spill]] %s1193_s26  ;;  %p960_p5 = por %p57_p4, %p56_p2 }
  0x19   : > { %s505_s4 = sshll.u32 %s1193_s26, 1  ;;  %p63_p7 = scmp.eq.s32.totalorder %s944_s23, 0 }
  0x1a   : > { %s43_s5 = sadd.s32 %s505_s4, %s1187_s25  ;;  %s140_s6 = ssub.s32 %s857_s21, %s1193_s26 }
  0x1b   : > { %p44_p8 = scmp.lt.s32.totalorder %s43_s5, 2  ;;  %p971_p9 = por %p63_p7, %p62_p6 }
  0x1c   : > { %p141_p10 = scmp.eq.s32.totalorder %s140_s6, 0  ;;  %s143_s8 = sadd.s32 1, %s829_s14 }
  0x1d   : > { %s1195_s5 = smov (!%p44_p8, %s43_s5), 2  ;;  %p153_p11 = scmp.ne.s32.totalorder %s829_s14, %s825_s13 }
  0x1e   : > { %s977_s9 = scalar_select %p141_p10, %s829_s14, %s143_s8  }
  0x1f   : > { %s46_s10 = ssub.s32 %s1191_s28, %s1195_s5  ;;  %p154_p13 = scmp.eq.s32.totalorder %s944_s23, 3 }
  0x20   : > { %1165 = sst [smem:[#allocation16_spill]] %s977_s9  ;;  %p47_p12 = scmp.eq.s32.totalorder %s46_s10, 0 }
  0x21   : > { %p159_p0 = scmp.ne.s32.totalorder %s825_s13, %s821_s12  ;;  %p160_p1 = scmp.eq.s32.totalorder %s503_s24, 3 }
  0x22   : > { %s987_s11 = scalar_select %p47_p12, %s841_s17, %s49_s29  }
  0x23   : > { %p989_p2 = por %p154_p13, %p153_p11  ;;  %p993_p3 = por %p160_p1, %p159_p0 }
  0x24   : > { %1166 = sst [smem:[#allocation17_spill]] %s987_s11  ;;  %p562_p4 = scmp.lt.s32.totalorder %s861_s22, 4 }
  0x25   : > { %s1155_s4 = sand.u32 1, %s841_s17   ;;  %s999_s5 = sshll.u32 %s1191_s28, 8 }
  0x26   : > { %s1003_s6 = sshll.u32 %s1155_s4, 4  ;;  %p1007_p6 = pnand %p562_p4, %p960_p5 }
  0x27   : > { %s203_s29 = sand.u32 1, %s861_s22   ;;  %s1170_s1 = sld [smem:[#allocation19_spill]] }
  0x28   : > { %s207_s25 = scalar_lea.vmem [#allocation5], %s1003_s6  ;;  %p524_p7 = scmp.ge.s32.totalorder %s861_s22, 1 }
  0x29   : > { %s219_s28 = sshll.u32 %s207_s25, 4  ;;  %s1018_s21 = scalar_lea.sflag [#allocation6], %s203_s29  ;;  %s220_s28 = int_to_ptr.vmem [resolvable:$true] %s219_s28 }
  0x2a   : > { %p655_p8 = pneg %p1007_p6  ;;  %s666_s30 = scalar_lea.vmem %s220_s28, 256 }
  0x2b   : > { %p667_p5 = scmp.ne.s32.totalorder %s220_s28, %s666_s30  ;;  %s863_s4 = smov [#allocation5]  }
  0x2c   : > { %s671_s20 = sshll.u32 %s863_s4, 4  ;;  %s672_s20 = int_to_ptr.vmem [resolvable:$false] %s671_s20 }
  0x2d   : > { %s217_s26 = scalar_lea.hbm %s1170_s1, %s999_s5  ;;  %p669_p10 = pnand %p667_p5, %p655_p8 }
  0x2e   : > { %s673_s11 = scalar_lea.vmem %s672_s20, 512  ;;  %p674_p12 = scmp.lt.s32.totalorder %s220_s28, %s672_s20 }
  0x2f   : > { %p670_p11 = pneg %p669_p10  ;;  %p675_p13 = scmp.lt.s32.totalorder %s673_s11, %s666_s30 }
  0x31   : > { %p676_p0 = por %p675_p13, %p674_p12 }
  0x33   : > { %p677_p1 = pnand %p676_p0, %p670_p11 }
  0x35   : > { %680 = shalt.err (!%p677_p1)
}
  0x36   : > { %554 = dma.hbm_to_vmem [thread:$0]  (!%p1007_p6), %s217_s26, 256, %s220_s28, %s1018_s21  }
  0x37   : > { %p247_p4 = scmp.lt.s32.totalorder %s861_s22, 5  ;;  %s1172_s0 = sld [smem:[#allocation18_spill]] }
  0x38   : > { %s184_s29 = scalar_lea.vmem [#allocation2], %s1003_s6  ;;  %s1173_s10 = sand.u32 1, %s841_s17  }
  0x39   : > { %p1031_p5 = pnand %p524_p7, %p247_p4  ;;  %s196_s8 = sshll.u32 %s184_s29, 4  ;;  %s197_s8 = int_to_ptr.vmem [resolvable:$true] %s196_s8 }
  0x3a   : > { %s181_s30 = scalar_lea.sflag [#allocation3], %s1173_s10  ;;  %s694_s1 = scalar_lea.vmem %s197_s8, 256 }
  0x3b   : > { %p695_p10 = scmp.ne.s32.totalorder %s197_s8, %s694_s1  ;;  %s864_s26 = smov [#allocation2]  }
  0x3c   : > { %s699_s28 = sshll.u32 %s864_s26, 4  ;;  %s700_s28 = int_to_ptr.vmem [resolvable:$false] %s699_s28 }
  0x3d   : > { %s194_s4 = scalar_lea.hbm %s1172_s0, %s999_s5  ;;  %p697_p11 = pnand %p695_p10, %p655_p8 }
  0x3e   : > { %s701_s9 = scalar_lea.vmem %s700_s28, 512  ;;  %p702_p7 = scmp.lt.s32.totalorder %s197_s8, %s700_s28 }
  0x3f   : > { %p698_p12 = pneg %p697_p11  ;;  %p703_p13 = scmp.lt.s32.totalorder %s701_s9, %s694_s1 }
  0x41   : > { %p704_p0 = por %p703_p13, %p702_p7 }
  0x43   : > { %p705_p1 = pnand %p704_p0, %p698_p12 }
  0x45   : > { %708 = shalt.err (!%p705_p1)
}
  0x46   : > { %551 = dma.hbm_to_vmem [thread:$0]  (!%p1007_p6), %s194_s4, 256, %s197_s8, %s181_s30  }
  0x47   : > { %s240_s29 = scalar_lea.hbm %s1150_s2, %s999_s5  ;;  %s230_s10 = scalar_lea.vmem [#allocation7], %s1003_s6 }
  0x48   : > { %s242_s0 = sshll.u32 %s230_s10, 4  ;;  %s865_s1 = smov [#allocation7]   ;;  %s243_s0 = int_to_ptr.vmem [resolvable:$true] %s242_s0 }
  0x49   : > { %s722_s26 = scalar_lea.vmem %s243_s0, 256  ;;  %s727_s9 = sshll.u32 %s865_s1, 4  ;;  %s728_s9 = int_to_ptr.vmem [resolvable:$false] %s727_s9 }
  0x4a   : > { %p723_p4 = scmp.ne.s32.totalorder %s243_s0, %s722_s26  ;;  %s729_s28 = scalar_lea.vmem %s728_s9, 512 }
  0x4b   : > { %p730_p12 = scmp.lt.s32.totalorder %s243_s0, %s728_s9  ;;  %p731_p7 = scmp.lt.s32.totalorder %s729_s28, %s722_s26 }
  0x4c   : > { %p725_p10 = pnand %p723_p4, %p655_p8 }
  0x4d   : > { %p732_p13 = por %p731_p7, %p730_p12 }
  0x4e   : > { %p726_p11 = pneg %p725_p10 }
  0x50   : > { %p733_p0 = pnand %p732_p13, %p726_p11 }
  0x52   : > { %736 = shalt.err (!%p733_p0)
}
  0x53   : > { %557 = dma.hbm_to_vmem [thread:$0]  (!%p1007_p6), %s240_s29, 256, %s243_s0, %s1018_s21  }
  0x54   : > { %251 = sbr.rel (%p1031_p5) target bundleno = 160 (0xa0), region = 32  ;;  %s253_s5 = sand.u32 (!%p1031_p5), 1, %s837_s16  }
  0x55   : > { %s1061_s6 = sshll.u32 (!%p1031_p5), %s253_s5, 4  ;;  %s254_s4 = scalar_lea.sflag (!%p1031_p5), [#allocation3], %s253_s5 }
  0x56   : > { %s257_s8 = scalar_lea.vmem (!%p1031_p5), [#allocation2], %s1061_s6 }
  0x59   : > { %808 = dma.done.wait (%p971_p9), %s254_s4, 256  }
  0x5a   : > { %810 = vsyncadd (%p971_p9), %s254_s4, 4294967040  ;;  %s262_s0 = sand.u32 1, %s944_s23   ;;  %s266_s24 = scalar_lea.vmem [#allocation5], %s1061_s6 }
  0x5b   : > { %s263_s21 = scalar_lea.sflag [#allocation6], %s262_s0 }
  0x5c   : > { %812 = dma.done.wait (%p971_p9), %s263_s21, 512  }
  0x5d   : > { %814 = vsyncadd (%p971_p9), %s263_s21, 4294966784  ;;  %s305_s25 = sand.u32 1, %s825_s13   ;;  %s529_s20 = sshll.u32 %s849_s19, 1 }
  0x5e   : > { %s528_s30 = sshll.u32 %s305_s25, 3  ;;  %s1079_s11 = sadd.s32 %s845_s18, %s529_s20 }
  0x5f   : > { %s275_s29 = scalar_lea.vmem [#allocation7], %s1061_s6  ;;  %s1082_s23 = scalar_lea.vmem [#allocation8], %s528_s30 }
  0x60   : > { %p530_p6 = scmp.ne.s32.totalorder %s845_s18, 0 }
  0x62   : > { %325 = sbr.rel (%p530_p6) target bundleno = 105 (0x69), region = 48 }
  0x67   : > { %v866_v0 = vmov 0.0  }
  0x68   : > { %326 = vst [vmem:[%s1082_s23] sm:$0xff] %v866_v0 }
  0x69 PF: > { %v327_v1 = vld [vmem:[%s257_s8] sm:$0xff]  ;;  %v328_v2 = vld [vmem:[%s257_s8 + $0x8] sm:$0xff]  ;;  %p531_p9 = scmp.ge.s32.totalorder %s1079_s11, 2 }
  0x6a   : > { %v329_v3 = vld [vmem:[%s266_s24] sm:$0xff]  ;;  %v330_v4 = vld [vmem:[%s266_s24 + $0x8] sm:$0xff]  ;;  %v331_v5 = vsub.f32 1.0, %v327_v1  ;;  %v332_v6 = vsub.f32 1.0, %v328_v2 }
  0x6b   : > { %v337_v9 = vld [vmem:[%s275_s29] sm:$0xff]  ;;  %v338_v10 = vld [vmem:[%s275_s29 + $0x8] sm:$0xff] }
  0x6c   : > { %v333_v7 = vadd.f32 %v331_v5, %v329_v3  ;;  %v334_v8 = vadd.f32 %v332_v6, %v330_v4  ;;  %344 = sbr.rel (%p531_p9) target bundleno = 119 (0x77), region = 52 }
  0x6e   : > { %v335_v11 = vmax.f32 %v333_v7, 0.0  ;;  %v336_v12 = vmax.f32 %v334_v8, 0.0 }
  0x70   : > { %v339_v13 = vmul.f32 %v337_v9, %v335_v11  ;;  %v340_v14 = vmul.f32 %v338_v10, %v336_v12 }
  0x71   : > { %v345_v15 = vld [vmem:[%s1082_s23] sm:$0xff] }
  0x72   : > { %v346_v16 = vadd.f32 %v340_v14, %v339_v13 }
  0x74   : > { %v347_v17 = vadd.f32 %v346_v16, %v345_v15 }
  0x76   : > { %348 = vst [vmem:[%s1082_s23] sm:$0xff] %v347_v17 }
  0x77 PF: > { %p532_p8 = scmp.ne.s32.totalorder %s1079_s11, 2 }
  0x79   : > { %352 = sbr.rel (%p532_p8) target bundleno = 137 (0x89), region = 56 }
  0x7e   : > { %v353_v18 = vlaneseq  ;;  %v360_v22 = vld [vmem:[%s1082_s23] sm:$0xff] }
  0x80   : > { %v354_v19 = vshrl.u32 %v353_v18, 7 }
  0x82   : > { %vm355_vm0 = vcmp.lt.s32.totalorder %v354_v19, 4 }
  0x83   : > { %v358_v20 = vsel %vm355_vm0, %v339_v13, 0.0  ;;  %v359_v21 = vsel %vm355_vm0, %v340_v14, 0.0 }
  0x84   : > { %v361_v23 = vadd.f32 %v359_v21, %v358_v20 }
  0x86   : > { %v362_v24 = vadd.f32 %v361_v23, %v360_v22 }
  0x88   : > { %363 = vst [vmem:[%s1082_s23] sm:$0xff] %v362_v24 }
  0x89 PF: > { %s534_s18 = sshll.u32 %s849_s19, 7  ;;  %s378_s1 = sshll.u32 %s1082_s23, 4  ;;  %s379_s1 = int_to_ptr.vmem [resolvable:$true] %s378_s1 }
  0x8a   : > { %s376_s26 = scalar_lea.hbm %s1151_s3, %s534_s18  ;;  %s365_s9 = scalar_lea.sflag [#allocation4], %s305_s25 }
  0x8b   : > { %s737_s28 = scalar_lea.vmem %s379_s1, 128  ;;  %s867_s5 = smov [#allocation8]  }
  0x8c   : > { %p738_p5 = scmp.ne.s32.totalorder %s379_s1, %s737_s28  ;;  %s741_s6 = sshll.u32 %s867_s5, 4  ;;  %s742_s6 = int_to_ptr.vmem [resolvable:$false] %s741_s6 }
  0x8d   : > { %s743_s4 = scalar_lea.vmem %s742_s6, 256  ;;  %p744_p10 = scmp.lt.s32.totalorder %s379_s1, %s742_s6 }
  0x8e   : > { %p739_p1 = pnand %p738_p5, %p989_p2  ;;  %p745_p11 = scmp.lt.s32.totalorder %s743_s4, %s737_s28 }
  0x90   : > { %p740_p4 = pneg %p739_p1  ;;  %p746_p12 = por %p745_p11, %p744_p10 }
  0x92   : > { %p747_p7 = pnand %p746_p12, %p740_p4 }
  0x94   : > { %750 = shalt.err (!%p747_p7)
}
  0x95   : > { %s751_s19 = scalar_lea.hbm %s376_s26, 128  ;;  %s755_s21 = scalar_lea.hbm %s1151_s3, 256 }
  0x96   : > { %p752_p13 = scmp.ne.s32.totalorder %s376_s26, %s751_s19  ;;  %p756_p9 = scmp.lt.s32.totalorder %s376_s26, %s1151_s3 }
  0x97   : > { %p757_p8 = scmp.lt.s32.totalorder %s755_s21, %s751_s19 }
  0x98   : > { %p753_p0 = pnand %p752_p13, %p989_p2 }
  0x99   : > { %p758_p5 = por %p757_p8, %p756_p9 }
  0x9a   : > { %p754_p6 = pneg %p753_p0 }
  0x9c   : > { %p759_p1 = pnand %p758_p5, %p754_p6 }
  0x9e   : > { %762 = shalt.err (!%p759_p1)
}
  0x9f   : > { %546 = dma.vmem_to_hbm [thread:$0]  (%p989_p2), %s379_s1, 128, %s376_s26, %s365_s9  }
  0xa0 PF: > { %p563_p4 = scmp.ge.s32.totalorder %s861_s22, 2  ;;  %s390_s30 = sand.u32 1, %s821_s12  }
  0xa1   : > { %s391_s20 = scalar_lea.sflag [#allocation4], %s390_s30 }
  0xa2   : > { %p559_p10 = pnand %p563_p4, %p993_p3 }
  0xa4   : > { %p560_p11 = pneg %p559_p10 }
  0xa6   : > { %816 = dma.done.wait (%p560_p11), %s391_s20, 128  }
  0xa7   : > { %818 = vsyncadd (%p560_p11), %s391_s20, 4294967168  ;;  %s22_s22 = sadd.s32 1, %s861_s22   ;;  %s1174_s11 = sld [smem:[#allocation16_spill]] }
  0xa8   : > { %p19_p12 = scmp.ge.s32.totalorder %s22_s22, 6   ;;  %s1175_s29 = sld [smem:[#allocation17_spill]] }
  0xa9   : > { %s1176_s18 = sld [smem:[#allocation12_spill]]  ;;  %s1180_s12 = smov %s825_s13 }
  0xaa   : > { %s1177_s19 = sld [smem:[#allocation13_spill]]  ;;  %s1181_s13 = smov %s829_s14 }
  0xab   : > { %s1178_s20 = sld [smem:[#allocation14_spill]]  ;;  %s1183_s15 = smov %s837_s16 }
  0xac   : > { %s1179_s21 = sld [smem:[#allocation15_spill]]  ;;  %s1184_s16 = smov %s841_s17 }
  0xad   : > { %s1182_s14 = smov %s1174_s11  ;;  %21 = sbr.rel (!%p19_p12) target bundleno = 14 (0xe), region = 113 }
  0xae   : > { %s1185_s17 = smov %s1175_s29 }
  0xb2   :  { %396 = vsyncpa [#allocation3], 1 }
  0xb3   :  { %398 = vsyncpa [#allocation3 + $0x1], 1 }
  0xb4   :  { %399 = vsyncpa [#allocation6], 1 }
  0xb5   :  { %401 = vsyncpa [#allocation6 + $0x1], 1 }
  0xb6   :  { %402 = vsyncpa [#allocation4], 1 }
  0xb7   :  { %404 = vsyncpa [#allocation4 + $0x1], 1 }

</bundles_post_ra>
